<compile_context>
chip_gen: v6e
topology: v6e:2x2x1
jax: 0.10.0
libtpu: 0.0.40
codegen_flags: <defaults>
</compile_context>

<pallas_src>
import functools

import jax
import jax.numpy as jnp
from jax.experimental import pallas as pl
from jax.experimental.pallas import tpu as pltpu

KSIZE = 5     # Conv1d kernel_size
PAD = 2       # Conv1d padding
ALIGN_L = 8   # sublane-aligned halo rows on the sequence dim
LANE = 128    # lane width / channel padding granularity


def _round_up(x, m):
    return ((x + m - 1) // m) * m


def _device_kind():
    try:
        return jax.devices()[0].device_kind.lower()
    except Exception:
        return ""


def _tap_groups(kind):
    # 128-deep-K MXU (v2..v5e): per-tap K=Cp dots -> no concat materialization,
    # same MXU passes, fewer vst/vld (v5e has a single vst slot).
    # 256-deep-K MXU (v6e/v7x): pairwise taps, K=2*Cp -> 3 MXU passes like full
    # im2col, but <=2x peak intermediate instead of 5x.
    if any(v in kind for v in ("v2", "v3", "v4", "v5")):
        return (1, 1, 1, 1, 1)
    return (2, 2, 1)


def resblock_kernel(x_ref, w1_ref, b1_ref, w2_ref, b2_ref, o_ref, *,
                    L_real, tap_groups):
    """One batch-block per grid step.

    x_ref  : (nb, L_r + 16, Cp) f32   input, ALIGN_L zero halo rows each side
    w1_ref : (5*Cp, Cp)         bf16  conv1 weights, tap-major packed
    b1_ref : (1, Cp)            f32
    w2_ref : (5*Cp, Cp)         bf16
    b2_ref : (1, Cp)            f32
    o_ref  : (nb, L_r, Cp)      f32
    """
    nb = x_ref.shape[0]
    Cp = x_ref.shape[2]
    L_r = o_ref.shape[1]
    M = nb * L_r
    base = ALIGN_L - PAD                      # first tap offset into the halo

    def conv(hp, w_ref):
        # hp: (nb, L_r + 2*ALIGN_L, Cp) bf16 with zero halos -> (M, Cp) f32
        acc = None
        off = 0
        for g in tap_groups:
            if g == 1:
                cols = hp[:, base + off: base + off + L_r, :]
            else:
                cols = jnp.concatenate(
                    [hp[:, base + off + k: base + off + k + L_r, :]
                     for k in range(g)], axis=-1)
            part = jnp.dot(cols.reshape(M, g * Cp),
                           w_ref[pl.ds(off * Cp, g * Cp), :],
                           preferred_element_type=jnp.float32)
            acc = part if acc is None else acc + part
            off += g
        return acc

    # ReLU #1; cast to bf16 BEFORE any im2col slicing (halves the copy/spill
    # traffic on the slice path; the zero halo stays zero under ReLU/cast).
    h = jnp.maximum(x_ref[...], 0.0).astype(jnp.bfloat16)   # (nb, L_r+16, Cp)

    # ----- Conv1d #1 ---------------------------------------------------------
    a1 = conv(h, w1_ref) + b1_ref[...]                       # (M, Cp) f32
    h2 = jnp.maximum(a1, 0.0).reshape(nb, L_r, Cp)           # ReLU #2 (f32)
    if L_real != L_r:
        # Rows beyond the real sequence length would be relu(b1); they must be
        # zero to act as conv2's zero padding.
        row = jax.lax.broadcasted_iota(jnp.int32, (nb, L_r, Cp), 1)
        h2 = jnp.where(row < L_real, h2, 0.0)
    h2 = h2.astype(jnp.bfloat16)

    # ----- Conv1d #2: re-pad in registers (sublane-aligned bf16 concat) -----
    zpad = jnp.zeros((nb, ALIGN_L, Cp), jnp.bfloat16)
    h2p = jnp.concatenate([zpad, h2, zpad], axis=1)          # (nb, L_r+16, Cp)
    a2 = (conv(h2p, w2_ref) + b2_ref[...]).reshape(nb, L_r, Cp)

    # ----- residual: re-read input from the ref (aligned, lane-dense vld,
    # scheduled under the second matmul; keeps x from being held live) -------
    o_ref[...] = x_ref[:, ALIGN_L:ALIGN_L + L_r, :] + 0.3 * a2


def resblock_forward(x_ncw, w1, b1, w2, b2):
    """x_ncw: (N, C, L) float32 (PyTorch NCW layout). Returns (N, C, L)."""
    N, C, L = x_ncw.shape
    Cp = _round_up(C, LANE)          # lane-dense channel dim
    L_r = _round_up(L, ALIGN_L)      # sublane-aligned sequence dim

    kind = _device_kind()
    tap_groups = _tap_groups(kind)

    # --- per-step batch block: target ~TARGET_M matmul rows per grid step ---
    TARGET_M = 1024
    nb = max(1, min(N, max(1, TARGET_M // max(L_r, 1))))
    # Force a >=2-step split only on 2-TensorCore chips with enough total work;
    # on single-TC v5e/v6e (or tiny problems) the grid is a serial loop and a
    # split is pure pipeline overhead.
    if "v7" in kind and N >= 2 and N * L_r >= 2 * TARGET_M:
        nb = min(nb, (N + 1) // 2)
    # keep the f32 input block comfortably small
    while nb > 1 and nb * (L_r + 2 * ALIGN_L) * Cp * 4 > (8 << 20):
        nb -= 1
    grid_n = pl.cdiv(N, nb)
    N_r = grid_n * nb

    # NCW -> NLC; pad batch, give the sequence an ALIGN_L zero halo per side
    # (plus rounding of L up to a multiple of ALIGN_L), pad channels to Cp.
    x_nlc = jnp.transpose(x_ncw, (0, 2, 1)).astype(jnp.float32)
    x_pad = jnp.pad(x_nlc, ((0, N_r - N),
                            (ALIGN_L, ALIGN_L + (L_r - L)),
                            (0, Cp - C)))

    # PyTorch Conv1d weight (C_out, C_in, K) -> tap-major packed (K*Cp, Cp),
    # bf16 for the MXU (accumulation stays f32 in the kernel).
    def pack_w(w):
        wp = jnp.pad(w, ((0, Cp - C), (0, Cp - C), (0, 0)))        # (Cp, Cp, K)
        wp = jnp.transpose(wp, (2, 1, 0)).reshape(KSIZE * Cp, Cp)  # (K*Cin, Cout)
        return wp.astype(jnp.bfloat16)

    w1p, w2p = pack_w(w1), pack_w(w2)
    b1r = jnp.pad(b1, (0, Cp - C)).reshape(1, Cp).astype(jnp.float32)
    b2r = jnp.pad(b2, (0, Cp - C)).reshape(1, Cp).astype(jnp.float32)

    # --- VMEM budget: 2x (double-buffered) in/out blocks + weights + a
    # generous bound on live intermediates; clamp to 48 MiB (v7x headroom). ---
    in_blk = nb * (L_r + 2 * ALIGN_L) * Cp * 4
    out_blk = nb * L_r * Cp * 4
    w_bytes = KSIZE * Cp * Cp * 2 + Cp * 4
    vmem_est = 2 * in_blk + 2 * out_blk + 2 * 2 * w_bytes + 4 * out_blk
    vmem_limit = int(min(48 << 20, max(32 << 20, 2 * vmem_est)))

    kernel = functools.partial(resblock_kernel, L_real=L, tap_groups=tap_groups)

    out_nlc = pl.pallas_call(
        kernel,
        out_shape=jax.ShapeDtypeStruct((N_r, L_r, Cp), jnp.float32),
        grid_spec=pltpu.PrefetchScalarGridSpec(
            num_scalar_prefetch=0,
            grid=(grid_n,),
            in_specs=[
                pl.BlockSpec((nb, L_r + 2 * ALIGN_L, Cp), lambda n: (n, 0, 0)),
                pl.BlockSpec((KSIZE * Cp, Cp), lambda n: (0, 0)),   # w1 packed
                pl.BlockSpec((1, Cp), lambda n: (0, 0)),            # b1
                pl.BlockSpec((KSIZE * Cp, Cp), lambda n: (0, 0)),   # w2 packed
                pl.BlockSpec((1, Cp), lambda n: (0, 0)),            # b2
            ],
            out_specs=pl.BlockSpec((nb, L_r, Cp), lambda n: (n, 0, 0)),
        ),
        compiler_params=pltpu.CompilerParams(
            dimension_semantics=("parallel",),
            vmem_limit_bytes=vmem_limit),
    )(x_pad, w1p, b1r, w2p, b2r)

    # Strip batch / sequence / channel padding, back to NCW.
    return jnp.transpose(out_nlc[:N, :L, :C], (0, 2, 1))


# ---------------------------- pure-JAX reference ----------------------------
def _conv1d_ref(x, w, b):
    # x: (N, C_in, L), w: (C_out, C_in, K), b: (C_out,)
    N, Ci, L = x.shape
    K = w.shape[2]
    xp = jnp.pad(x, ((0, 0), (0, 0), (PAD, PAD)))
    out = jnp.zeros((N, w.shape[0], L), jnp.float32)
    for k in range(K):
        out = out + jnp.einsum('ncl,oc->nol', xp[:, :, k:k + L], w[:, :, k])
    return out + b[None, :, None]


def _resblock_ref(x, w1, b1, w2, b2):
    h = _conv1d_ref(jax.nn.relu(x), w1, b1)
    h = _conv1d_ref(jax.nn.relu(h), w2, b2)
    return x + 0.3 * h


if __name__ == "__main__":
    batch, hidden, seq = 2, 32, 16

    key = jax.random.PRNGKey(0)
    kx, kw1, kb1, kw2, kb2 = jax.random.split(key, 5)

    x = jax.random.normal(kx, (batch, hidden, seq), dtype=jnp.float32)
    # Conv1d params: weight (C_out, C_in, K), bias (C_out,)
    scale = 1.0 / (hidden * KSIZE) ** 0.5
    w1 = jax.random.normal(kw1, (hidden, hidden, KSIZE), jnp.float32) * scale
    b1 = jax.random.normal(kb1, (hidden,), jnp.float32) * scale
    w2 = jax.random.normal(kw2, (hidden, hidden, KSIZE), jnp.float32) * scale
    b2 = jax.random.normal(kb2, (hidden,), jnp.float32) * scale

    out = resblock_forward(x, w1, b1, w2, b2)
    out = jax.block_until_ready(out)

    ref = _resblock_ref(x, w1, b1, w2, b2)
    assert out.shape == (batch, hidden, seq)
    # bf16 matmul inputs with f32 accumulation -> slightly looser tolerance.
    assert jnp.allclose(out, ref, atol=3e-2, rtol=3e-2), (
        f"max err {jnp.max(jnp.abs(out - ref))}")

    print("KERNEL_OK")
</pallas_src>

<mosaic_0001>
module attributes {stable_mosaic.version = 11 : i64} {
  func.func @resblock_kernel(%arg0: i32, %arg1: memref<2x32x128xf32, #tpu.memory_space<vmem>>, %arg2: memref<640x128xbf16, #tpu.memory_space<vmem>>, %arg3: memref<1x128xf32, #tpu.memory_space<vmem>>, %arg4: memref<640x128xbf16, #tpu.memory_space<vmem>>, %arg5: memref<1x128xf32, #tpu.memory_space<vmem>>, %arg6: memref<2x16x128xf32, #tpu.memory_space<vmem>>) attributes {dimension_semantics = [#tpu.dimension_semantics<parallel>], iteration_bounds = array<i64: 1>, scalar_prefetch = 0 : i64, scratch_operands = 0 : i64, tpu.core_type = #tpu.core_type<tc>, window_params = [{transform_indices = @transform_0, window_bounds = array<i64: 2, 32, 128>}, {pipeline_mode = #tpu.pipeline_mode<synchronous>, transform_indices = @transform_1, window_bounds = array<i64: 640, 128>}, {pipeline_mode = #tpu.pipeline_mode<synchronous>, transform_indices = @transform_2, window_bounds = array<i64: 1, 128>}, {pipeline_mode = #tpu.pipeline_mode<synchronous>, transform_indices = @transform_3, window_bounds = array<i64: 640, 128>}, {pipeline_mode = #tpu.pipeline_mode<synchronous>, transform_indices = @transform_4, window_bounds = array<i64: 1, 128>}, {transform_indices = @transform_5, window_bounds = array<i64: 2, 16, 128>}]} {
    %c0 = arith.constant 0 : index
    %c0_0 = arith.constant 0 : index
    %c0_1 = arith.constant 0 : index
    %0 = vector.load %arg1[%c0, %c0_0, %c0_1] : memref<2x32x128xf32, #tpu.memory_space<vmem>>, vector<2x32x128xf32>
    %cst = arith.constant 0.000000e+00 : f32
    %1 = vector.broadcast %cst : f32 to vector<2x32x128xf32>
    %2 = arith.maximumf %0, %1 : vector<2x32x128xf32>
    %3 = arith.truncf %2 : vector<2x32x128xf32> to vector<2x32x128xbf16>
    %4 = vector.extract_strided_slice %3 {offsets = [0, 6, 0], sizes = [2, 16, 128], strides = [1, 1, 1]} : vector<2x32x128xbf16> to vector<2x16x128xbf16>
    %5 = vector.extract_strided_slice %3 {offsets = [0, 7, 0], sizes = [2, 16, 128], strides = [1, 1, 1]} : vector<2x32x128xbf16> to vector<2x16x128xbf16>
    %6 = tpu.concatenate %4, %5 in 2 : vector<2x16x128xbf16>, vector<2x16x128xbf16> -> vector<2x16x256xbf16>
    %7 = vector.shape_cast %6 : vector<2x16x256xbf16> to vector<32x256xbf16>
    %c0_2 = arith.constant 0 : index
    %c0_3 = arith.constant 0 : index
    %8 = vector.load %arg2[%c0_2, %c0_3] : memref<640x128xbf16, #tpu.memory_space<vmem>>, vector<256x128xbf16>
    %cst_4 = arith.constant dense<0.000000e+00> : vector<32x128xf32>
    %9 = tpu.matmul %7, %8, %cst_4 {dimension_numbers = #tpu.dot_dimension_numbers<[1], [0], [0], [1], [0, 0, 1, 1], [], []>} : vector<32x256xbf16>, vector<256x128xbf16>, vector<32x128xf32> -> vector<32x128xf32>
    %10 = vector.extract_strided_slice %3 {offsets = [0, 8, 0], sizes = [2, 16, 128], strides = [1, 1, 1]} : vector<2x32x128xbf16> to vector<2x16x128xbf16>
    %11 = vector.extract_strided_slice %3 {offsets = [0, 9, 0], sizes = [2, 16, 128], strides = [1, 1, 1]} : vector<2x32x128xbf16> to vector<2x16x128xbf16>
    %12 = tpu.concatenate %10, %11 in 2 : vector<2x16x128xbf16>, vector<2x16x128xbf16> -> vector<2x16x256xbf16>
    %13 = vector.shape_cast %12 : vector<2x16x256xbf16> to vector<32x256xbf16>
    %c256 = arith.constant 256 : index
    %c0_5 = arith.constant 0 : index
    %14 = vector.load %arg2[%c256, %c0_5] : memref<640x128xbf16, #tpu.memory_space<vmem>>, vector<256x128xbf16>
    %cst_6 = arith.constant dense<0.000000e+00> : vector<32x128xf32>
    %15 = tpu.matmul %13, %14, %cst_6 {dimension_numbers = #tpu.dot_dimension_numbers<[1], [0], [0], [1], [0, 0, 1, 1], [], []>} : vector<32x256xbf16>, vector<256x128xbf16>, vector<32x128xf32> -> vector<32x128xf32>
    %16 = arith.addf %9, %15 : vector<32x128xf32>
    %17 = vector.extract_strided_slice %3 {offsets = [0, 10, 0], sizes = [2, 16, 128], strides = [1, 1, 1]} : vector<2x32x128xbf16> to vector<2x16x128xbf16>
    %18 = vector.shape_cast %17 : vector<2x16x128xbf16> to vector<32x128xbf16>
    %c512 = arith.constant 512 : index
    %c0_7 = arith.constant 0 : index
    %19 = vector.load %arg2[%c512, %c0_7] : memref<640x128xbf16, #tpu.memory_space<vmem>>, vector<128x128xbf16>
    %cst_8 = arith.constant dense<0.000000e+00> : vector<32x128xf32>
    %20 = tpu.matmul %18, %19, %cst_8 {dimension_numbers = #tpu.dot_dimension_numbers<[1], [0], [0], [1], [0, 0, 1, 1], [], []>} : vector<32x128xbf16>, vector<128x128xbf16>, vector<32x128xf32> -> vector<32x128xf32>
    %21 = arith.addf %16, %20 : vector<32x128xf32>
    %c0_9 = arith.constant 0 : index
    %c0_10 = arith.constant 0 : index
    %22 = vector.load %arg3[%c0_9, %c0_10] : memref<1x128xf32, #tpu.memory_space<vmem>>, vector<1x128xf32>
    %23 = vector.broadcast %22 : vector<1x128xf32> to vector<32x128xf32>
    %24 = arith.addf %21, %23 : vector<32x128xf32>
    %cst_11 = arith.constant 0.000000e+00 : f32
    %25 = vector.broadcast %cst_11 : f32 to vector<32x128xf32>
    %26 = arith.maximumf %24, %25 : vector<32x128xf32>
    %27 = vector.shape_cast %26 : vector<32x128xf32> to vector<2x16x128xf32>
    %28 = arith.truncf %27 : vector<2x16x128xf32> to vector<2x16x128xbf16>
    %cst_12 = arith.constant 0.000000e+00 : bf16
    %29 = vector.broadcast %cst_12 : bf16 to vector<2x8x128xbf16>
    %30 = tpu.concatenate %29, %28, %29 in 1 : vector<2x8x128xbf16>, vector<2x16x128xbf16>, vector<2x8x128xbf16> -> vector<2x32x128xbf16>
    %31 = vector.extract_strided_slice %30 {offsets = [0, 6, 0], sizes = [2, 16, 128], strides = [1, 1, 1]} : vector<2x32x128xbf16> to vector<2x16x128xbf16>
    %32 = vector.extract_strided_slice %30 {offsets = [0, 7, 0], sizes = [2, 16, 128], strides = [1, 1, 1]} : vector<2x32x128xbf16> to vector<2x16x128xbf16>
    %33 = tpu.concatenate %31, %32 in 2 : vector<2x16x128xbf16>, vector<2x16x128xbf16> -> vector<2x16x256xbf16>
    %34 = vector.shape_cast %33 : vector<2x16x256xbf16> to vector<32x256xbf16>
    %c0_13 = arith.constant 0 : index
    %c0_14 = arith.constant 0 : index
    %35 = vector.load %arg4[%c0_13, %c0_14] : memref<640x128xbf16, #tpu.memory_space<vmem>>, vector<256x128xbf16>
    %cst_15 = arith.constant dense<0.000000e+00> : vector<32x128xf32>
    %36 = tpu.matmul %34, %35, %cst_15 {dimension_numbers = #tpu.dot_dimension_numbers<[1], [0], [0], [1], [0, 0, 1, 1], [], []>} : vector<32x256xbf16>, vector<256x128xbf16>, vector<32x128xf32> -> vector<32x128xf32>
    %37 = vector.extract_strided_slice %30 {offsets = [0, 8, 0], sizes = [2, 16, 128], strides = [1, 1, 1]} : vector<2x32x128xbf16> to vector<2x16x128xbf16>
    %38 = vector.extract_strided_slice %30 {offsets = [0, 9, 0], sizes = [2, 16, 128], strides = [1, 1, 1]} : vector<2x32x128xbf16> to vector<2x16x128xbf16>
    %39 = tpu.concatenate %37, %38 in 2 : vector<2x16x128xbf16>, vector<2x16x128xbf16> -> vector<2x16x256xbf16>
    %40 = vector.shape_cast %39 : vector<2x16x256xbf16> to vector<32x256xbf16>
    %c256_16 = arith.constant 256 : index
    %c0_17 = arith.constant 0 : index
    %41 = vector.load %arg4[%c256_16, %c0_17] : memref<640x128xbf16, #tpu.memory_space<vmem>>, vector<256x128xbf16>
    %cst_18 = arith.constant dense<0.000000e+00> : vector<32x128xf32>
    %42 = tpu.matmul %40, %41, %cst_18 {dimension_numbers = #tpu.dot_dimension_numbers<[1], [0], [0], [1], [0, 0, 1, 1], [], []>} : vector<32x256xbf16>, vector<256x128xbf16>, vector<32x128xf32> -> vector<32x128xf32>
    %43 = arith.addf %36, %42 : vector<32x128xf32>
    %44 = vector.extract_strided_slice %30 {offsets = [0, 10, 0], sizes = [2, 16, 128], strides = [1, 1, 1]} : vector<2x32x128xbf16> to vector<2x16x128xbf16>
    %45 = vector.shape_cast %44 : vector<2x16x128xbf16> to vector<32x128xbf16>
    %c512_19 = arith.constant 512 : index
    %c0_20 = arith.constant 0 : index
    %46 = vector.load %arg4[%c512_19, %c0_20] : memref<640x128xbf16, #tpu.memory_space<vmem>>, vector<128x128xbf16>
    %cst_21 = arith.constant dense<0.000000e+00> : vector<32x128xf32>
    %47 = tpu.matmul %45, %46, %cst_21 {dimension_numbers = #tpu.dot_dimension_numbers<[1], [0], [0], [1], [0, 0, 1, 1], [], []>} : vector<32x128xbf16>, vector<128x128xbf16>, vector<32x128xf32> -> vector<32x128xf32>
    %48 = arith.addf %43, %47 : vector<32x128xf32>
    %c0_22 = arith.constant 0 : index
    %c0_23 = arith.constant 0 : index
    %49 = vector.load %arg5[%c0_22, %c0_23] : memref<1x128xf32, #tpu.memory_space<vmem>>, vector<1x128xf32>
    %50 = vector.broadcast %49 : vector<1x128xf32> to vector<32x128xf32>
    %51 = arith.addf %48, %50 : vector<32x128xf32>
    %52 = vector.shape_cast %51 : vector<32x128xf32> to vector<2x16x128xf32>
    %c0_24 = arith.constant 0 : index
    %c8 = arith.constant 8 : index
    %c0_25 = arith.constant 0 : index
    %53 = vector.load %arg1[%c0_24, %c8, %c0_25] : memref<2x32x128xf32, #tpu.memory_space<vmem>>, vector<2x16x128xf32>
    %cst_26 = arith.constant 3.000000e-01 : f32
    %54 = vector.broadcast %cst_26 : f32 to vector<2x16x128xf32>
    %55 = arith.mulf %54, %52 : vector<2x16x128xf32>
    %56 = arith.addf %53, %55 : vector<2x16x128xf32>
    %c0_27 = arith.constant 0 : index
    %c0_28 = arith.constant 0 : index
    %c0_29 = arith.constant 0 : index
    %57 = vector.load %arg6[%c0_27, %c0_28, %c0_29] : memref<2x16x128xf32, #tpu.memory_space<vmem>>, vector<2x16x128xf32>
    tpu.vector_store %arg6[%c0_27, %c0_28, %c0_29], %56 {strides = array<i32>} : memref<2x16x128xf32, #tpu.memory_space<vmem>>, vector<2x16x128xf32>,
    return
  }
  func.func @transform_0(%arg0: i32) -> (i32, i32, i32) {
    %c0_i32 = arith.constant 0 : i32
    %c0_i32_0 = arith.constant 0 : i32
    %c0_i32_1 = arith.constant 0 : i32
    return %arg0, %c0_i32, %c0_i32_0 : i32, i32, i32
  }
  func.func @transform_1(%arg0: i32) -> (i32, i32) {
    %c0_i32 = arith.constant 0 : i32
    %c0_i32_0 = arith.constant 0 : i32
    %c0_i32_1 = arith.constant 0 : i32
    return %c0_i32, %c0_i32_0 : i32, i32
  }
  func.func @transform_2(%arg0: i32) -> (i32, i32) {
    %c0_i32 = arith.constant 0 : i32
    %c0_i32_0 = arith.constant 0 : i32
    %c0_i32_1 = arith.constant 0 : i32
    return %c0_i32, %c0_i32_0 : i32, i32
  }
  func.func @transform_3(%arg0: i32) -> (i32, i32) {
    %c0_i32 = arith.constant 0 : i32
    %c0_i32_0 = arith.constant 0 : i32
    %c0_i32_1 = arith.constant 0 : i32
    return %c0_i32, %c0_i32_0 : i32, i32
  }
  func.func @transform_4(%arg0: i32) -> (i32, i32) {
    %c0_i32 = arith.constant 0 : i32
    %c0_i32_0 = arith.constant 0 : i32
    %c0_i32_1 = arith.constant 0 : i32
    return %c0_i32, %c0_i32_0 : i32, i32
  }
  func.func @transform_5(%arg0: i32) -> (i32, i32, i32) {
    %c0_i32 = arith.constant 0 : i32
    %c0_i32_0 = arith.constant 0 : i32
    %c0_i32_1 = arith.constant 0 : i32
    return %arg0, %c0_i32, %c0_i32_0 : i32, i32, i32
  }
}

</mosaic_0001>

<bundles_post_ra>
// kernel: tpu_custom_call.1
= control target key start
LH: loop header
LB: loop body
LE: loop exit
PB: predicated region body
PF: predicated region fallthrough
CT: control target
= control target key end

     0   :  { %10 = vsyncpa [#allocation3], 0  ;;  %s1827_s0 = inlined_call_operand.hbm [shape: f32[2,32,128], index: 0, kind: input, shape index: {}]   ;;  %s1828_s1 = inlined_call_operand.hbm [shape: bf16[640,128], index: 1, kind: input, shape index: {}]   ;;  %s1829_s2 = inlined_call_operand.vmem [shape: f32[1,128], index: 2, kind: input, shape index: {}]   ;;  %s1830_s3 = inlined_call_operand.hbm [shape: bf16[640,128], index: 3, kind: input, shape index: {}]   ;;  %s1831_s4 = inlined_call_operand.vmem [shape: f32[1,128], index: 4, kind: input, shape index: {}]   ;;  %s1832_s5 = inlined_call_operand.hbm [shape: f32[2,16,128], index: 5, kind: output, shape index: {}]  }
   0x1   :  { %11 = vsyncpa [#allocation6], 0 }
   0x2   :  { %12 = vsyncpa [#allocation4], 0  ;;  %s1675_s18 = smov [#allocation5]  }
   0x3   :  { %s30_s19 = sshll.u32 %s1675_s18, 4  ;;  %s31_s19 = int_to_ptr.vmem [resolvable:$true] %s30_s19 }
   0x4   :  { %s1597_s20 = scalar_lea.vmem %s31_s19, 5120  ;;  %p1602_p1 = scmp.lt.s32.totalorder %s31_s19, %s31_s19 }
   0x5   :  { %p1598_p0 = scmp.ne.s32.totalorder %s31_s19, %s1597_s20  ;;  %p1603_p2 = scmp.lt.s32.totalorder %s1597_s20, %s1597_s20 }
   0x7   :  { %p1604_p3 = por %p1603_p2, %p1602_p1 }
   0x9   :  { %p1605_p4 = pnand %p1604_p3, %p1598_p0 }
   0xb   :  { %1608 = shalt.err (!%p1605_p4)
}
   0xc   :  { %s1676_s21 = smov 64   ;;  %s1677_s22 = smov 4  }
   0xd   :  { %36 = dma.hbm_to_vmem [thread:$0]  %s1828_s1, 5120, %s31_s19, [#allocation6], %s1676_s21, %s1676_s21, %s1677_s22  }
   0xe   :  { %s1678_s25 = smov [#allocation2]  }
   0xf   :  { %s18_s26 = sshll.u32 %s1678_s25, 4  ;;  %s19_s26 = int_to_ptr.vmem [resolvable:$true] %s18_s26 }
  0x10   :  { %s1617_s27 = scalar_lea.vmem %s19_s26, 1024  ;;  %p1622_p6 = scmp.lt.s32.totalorder %s19_s26, %s19_s26 }
  0x11   :  { %p1618_p5 = scmp.ne.s32.totalorder %s19_s26, %s1617_s27  ;;  %p1623_p7 = scmp.lt.s32.totalorder %s1617_s27, %s1617_s27 }
  0x13   :  { %p1624_p8 = por %p1623_p7, %p1622_p6 }
  0x15   :  { %p1625_p9 = pnand %p1624_p8, %p1618_p5 }
  0x17   :  { %1628 = shalt.err (!%p1625_p9)
}
  0x18   :  { %s1679_s28 = smov 128   ;;  %s1680_s29 = smov 8  }
  0x19   :  { %24 = dma.hbm_to_vmem [thread:$0]  %s1827_s0, 1024, %s19_s26, [#allocation3], %s1679_s28, %s1679_s28, %s1680_s29  }
  0x1a   :  { %s1681_s1 = smov [#allocation7]  }
  0x1b   :  { %s44_s7 = sshll.u32 %s1681_s1, 4  ;;  %s45_s7 = int_to_ptr.vmem [resolvable:$true] %s44_s7 }
  0x1c   :  { %s1637_s8 = scalar_lea.vmem %s45_s7, 5120  ;;  %p1642_p11 = scmp.lt.s32.totalorder %s45_s7, %s45_s7 }
  0x1d   :  { %p1638_p10 = scmp.ne.s32.totalorder %s45_s7, %s1637_s8  ;;  %p1643_p12 = scmp.lt.s32.totalorder %s1637_s8, %s1637_s8 }
  0x1f   :  { %p1644_p13 = por %p1643_p12, %p1642_p11 }
  0x21   :  { %p1645_p0 = pnand %p1644_p13, %p1638_p10 }
  0x23   :  { %1648 = shalt.err (!%p1645_p0)
}
  0x24   :  { %50 = dma.hbm_to_vmem [thread:$0]  %s1830_s3, 5120, %s45_s7, [#allocation6], %s1676_s21, %s1676_s21, %s1677_s22  }
  0x25   :  { %1669 = dma.done.wait [#allocation3], 1024  }
  0x26   :  { %1670 = vsyncadd [#allocation3], 4294966272 }
  0x27   :  { %1671 = dma.done.wait [#allocation6], 10240  }
  0x28   :  { %1672 = vsyncadd [#allocation6], 4294957056  ;;  %v1509_v0 = vld [vmem:[#allocation5 + $0xf8] sm:$0xff]   ;;  %v1513_v4 = vld [vmem:[#allocation5 + $0xf0] sm:$0xff]   ;;  %vm83_vm0 = vsmask.f32 7424 }
  0x29   :  { %v1510_v1 = vld [vmem:[#allocation5 + $0x78] sm:$0xff]   ;;  %1329 = vmatprep.subr.bf16.mxu0 %v1509_v0  ;;  %v1514_v5 = vld [vmem:[#allocation5 + $0x70] sm:$0xff]   ;;  %v1517_v8 = vld [vmem:[#allocation5 + $0xe8] sm:$0xff]   ;;  %vm167_vm1 = vcmask 1043456   ;;  %vm118_vm2 = vcmask 1044480   ;;  %vm506_vm3 = vcmask 1042432  }
  0x2a   :  { %v1511_v2 = vld [vmem:[#allocation5 + $0xb8] sm:$0xff]   ;;  %1357 = vmatprep.subr.bf16.mxu1 %v1510_v1  ;;  %v1515_v6 = vld [vmem:[#allocation5 + $0xb0] sm:$0xff]   ;;  %v1518_v9 = vld [vmem:[#allocation5 + $0x68] sm:$0xff]  }
  0x2b   :  { %v1512_v3 = vld [vmem:[#allocation5 + $0x38] sm:$0xff]   ;;  %1330 = vmatpush3.bf16.msra.mxu0 %v1511_v2  ;;  %v1516_v7 = vld [vmem:[#allocation5 + $0x30] sm:$0xff]   ;;  %v1519_v10 = vld [vmem:[#allocation5 + $0xa8] sm:$0xff]  }
  0x2c   :  { %1358 = vmatpush3.bf16.msra.mxu1 %v1512_v3  ;;  %1331 = vmatprep.subr.bf16.mxu0 %v1513_v4  ;;  %v1520_v11 = vld [vmem:[#allocation5 + $0x28] sm:$0xff]   ;;  %v1521_v12 = vld [vmem:[#allocation5 + $0xe0] sm:$0xff]   ;;  %v1525_v16 = vld [vmem:[#allocation5 + $0xd8] sm:$0xff]  }
  0x2d   :  { %1359 = vmatprep.subr.bf16.mxu1 %v1514_v5  ;;  %v1522_v13 = vld [vmem:[#allocation5 + $0x60] sm:$0xff]   ;;  %v1526_v17 = vld [vmem:[#allocation5 + $0x58] sm:$0xff]   ;;  %v1529_v20 = vld [vmem:[#allocation5 + $0xd0] sm:$0xff]  }
  0x2e   :  { %v1523_v14 = vld [vmem:[#allocation5 + $0xa0] sm:$0xff]   ;;  %v1527_v18 = vld [vmem:[#allocation5 + $0x98] sm:$0xff]   ;;  %v1530_v21 = vld [vmem:[#allocation5 + $0x50] sm:$0xff]  }
  0x2f   :  { %1332 = vmatpush3.bf16.msra.mxu0 %v1515_v6  ;;  %v1524_v15 = vld [vmem:[#allocation5 + $0x20] sm:$0xff]   ;;  %v1528_v19 = vld [vmem:[#allocation5 + $0x18] sm:$0xff]   ;;  %v1531_v22 = vld [vmem:[#allocation5 + $0x90] sm:$0xff]  }
  0x30   :  { %1360 = vmatpush3.bf16.msra.mxu1 %v1516_v7  ;;  %1333 = vmatprep.subr.bf16.mxu0 %v1517_v8  ;;  %v1532_v23 = vld [vmem:[#allocation5 + $0x10] sm:$0xff]   ;;  %v1533_v24 = vld [vmem:[#allocation5 + $0xc8] sm:$0xff]   ;;  %v1537_v28 = vld [vmem:[#allocation5 + $0xc0] sm:$0xff]  }
  0x31   :  { %1361 = vmatprep.subr.bf16.mxu1 %v1518_v9  ;;  %v1534_v25 = vld [vmem:[#allocation5 + $0x48] sm:$0xff]   ;;  %v1538_v29 = vld [vmem:[#allocation5 + $0x40] sm:$0xff]   ;;  %v1727_v34 = vld [vmem:[#allocation2 + $0x10] sm:$0xff] }
  0x32   :  { %v1535_v26 = vld [vmem:[#allocation5 + $0x88] sm:$0xff]   ;;  %v1539_v30 = vld [vmem:[#allocation5 + $0x80] sm:$0xff]   ;;  %v66_v35 = vld [vmem:[#allocation2 + $0x18] sm:$0xff]  ;;  %v73_v38 = vmax.f32 %v1727_v34, 0.0 }
  0x33   :  { %1334 = vmatpush3.bf16.msra.mxu0 %v1519_v10  ;;  %v1536_v27 = vld [vmem:[#allocation5 + $0x8] sm:$0xff]   ;;  %v1540_v31 = vld [vmem:[#allocation5] sm:$0xff]   ;;  %v74_v39 = vmax.f32 %v66_v35, 0.0  ;;  %v1541_v40 = vld [vmem:[#allocation5 + $0x138] sm:$0xff]  }
  0x34   :  { %1362 = vmatpush3.bf16.msra.mxu1 %v1520_v11  ;;  %1335 = vmatprep.subr.bf16.mxu0 %v1521_v12  ;;  %v63_v32 = vld [vmem:[#allocation2] sm:$0xff]  ;;  %v1725_v33 = vld [vmem:[#allocation2 + $0x8] sm:$0xff]  ;;  %v1745_v55 = vld [vmem:[#allocation2 + $0x30] sm:$0xff] }
  0x35   :  { %1363 = vmatprep.subr.bf16.mxu1 %v1522_v13  ;;  %v71_v36 = vmax.f32 %v63_v32, 0.0  ;;  %v72_v37 = vmax.f32 %v1725_v33, 0.0  ;;  %v1733_v42 = vpack.c.bf16 %v74_v39, %v73_v38  ;;  %v67_v52 = vld [vmem:[#allocation2 + $0x20] sm:$0xff]  ;;  %v1743_v54 = vld [vmem:[#allocation2 + $0x28] sm:$0xff]  ;;  %v70_v56 = vld [vmem:[#allocation2 + $0x38] sm:$0xff]  ;;  %v77_v60 = vmax.f32 %v1745_v55, 0.0 }
  0x36   :  { %v75_v57 = vmax.f32 %v67_v52, 0.0  ;;  %v76_v59 = vmax.f32 %v1743_v54, 0.0  ;;  %v78_v61 = vmax.f32 %v70_v56, 0.0  ;;  %v1542_v8 = vld [vmem:[#allocation5 + $0x130] sm:$0xff]   ;;  %v1557_v56 = vld [vmem:[#allocation7 + $0xe8] sm:$0xff]  }
  0x37   :  { %1336 = vmatpush3.bf16.msra.mxu0 %v1523_v14  ;;  %v1731_v41 = vpack.c.bf16 %v72_v37, %v71_v36  ;;  %v92_v47 = vshll.u32 %v1733_v42, 16  ;;  %v96_v48 = vshrl.u32 %v1733_v42, 16  ;;  %v169_v49 = vrot.slane %v1733_v42, 4  ;;  %v1555_v52 = vld [vmem:[#allocation7 + $0x70] sm:$0xff]  }
  0x38   :  { %1364 = vmatpush3.bf16.msra.mxu1 %v1524_v15  ;;  %1337 = vmatprep.subr.bf16.mxu0 %v1525_v16  ;;  %v120_v50 = vrot.slane %v1733_v42, 3  ;;  %v1752_v2 = vpack.c.bf16 %v76_v59, %v75_v57  ;;  %v1754_v3 = vpack.c.bf16 %v78_v61, %v77_v60  ;;  %v1558_v57 = vld [vmem:[#allocation7 + $0xa8] sm:$0xff]   ;;  %v1561_v60 = vld [vmem:[#allocation7 + $0xe0] sm:$0xff]  }
  0x39   :  { %1365 = vmatprep.subr.bf16.mxu1 %v1526_v17  ;;  %v85_v43 = vshrl.u32 %v1731_v41, 16  ;;  %v87_v44 = vshll.u32 %v1731_v41, 16  ;;  %v168_v45 = vrot.slane %v1731_v41, 4  ;;  %v119_v46 = vrot.slane %v1731_v41, 3  ;;  %v1560_v59 = vld [vmem:[#allocation7 + $0x28] sm:$0xff]   ;;  %v1562_v61 = vld [vmem:[#allocation7 + $0xa0] sm:$0xff]  }
  0x3a   :  { %v94_v53 = vrot.slane %v92_v47, 1  ;;  %v100_v9 = vshrl.u32 %v1752_v2, 16  ;;  %v102_v10 = vshll.u32 %v1752_v2, 16  ;;  %v107_v11 = vshll.u32 %v1754_v3, 16  ;;  %v1550_v47 = vld [vmem:[#allocation7 + $0xb8] sm:$0xff]  }
  0x3b   :  { %1338 = vmatpush3.bf16.msra.mxu0 %v1527_v18  ;;  %v89_v51 = vrot.slane %v87_v44, 1  ;;  %v170_v63 = vsel %vm167_vm1, %v168_v45, %v169_v49  ;;  %v121_v1 = vsel %vm118_vm2, %v119_v46, %v120_v50  ;;  %v111_v12 = vshrl.u32 %v1754_v3, 16  ;;  %v1548_v44 = vld [vmem:[#allocation5 + $0x100] sm:$0xff]   ;;  %v1549_v46 = vld [vmem:[#allocation7 + $0xf8] sm:$0xff]   ;;  %v1553_v50 = vld [vmem:[#allocation7 + $0xf0] sm:$0xff]  }
  0x3c   :  { %1366 = vmatpush3.bf16.msra.mxu1 %v1528_v19  ;;  %1339 = vmatprep.subr.bf16.mxu0 %v1529_v20  ;;  %v98_v62 = vor.u32 %v96_v48, %v94_v53  ;;  %v174_v15 = vrot.slane %v1752_v2, 4  ;;  %v507_v16 = vrot.slane %v1731_v41, 5  ;;  %v104_v17 = vrot.slane %v102_v10, 1  ;;  %v1545_v41 = vld [vmem:[#allocation5 + $0x118] sm:$0xff]   ;;  %v1575_v10 = vld [vmem:[#allocation7 + $0x48] sm:$0xff]  }
  0x3d   :  { %1367 = vmatprep.subr.bf16.mxu1 %v1530_v21  ;;  %v90_v58 = vor.u32 %v89_v51, %v85_v43  ;;  %v109_v18 = vrot.slane %v107_v11, 1  ;;  %v175_v19 = vrot.slane %v1754_v3, 4  ;;  %v125_v20 = vrot.slane %v1752_v2, 3  ;;  %v1543_v21 = vld [vmem:[#allocation5 + $0x128] sm:$0xff]   ;;  %v1551_v48 = vld [vmem:[#allocation7 + $0x78] sm:$0xff]   ;;  %v1554_v51 = vld [vmem:[#allocation7 + $0xb0] sm:$0xff]  }
  0x3e   :  { %v172_v5 = vrot.slane %v98_v62, 4  ;;  %v123_v7 = vrot.slane %v98_v62, 3  ;;  %v1547_v43 = vld [vmem:[#allocation5 + $0x108] sm:$0xff]   ;;  %v1552_v49 = vld [vmem:[#allocation7 + $0x38] sm:$0xff]   ;;  %v1563_v62 = vld [vmem:[#allocation7 + $0x60] sm:$0xff]  }
  0x3f   :  { %1340 = vmatpush3.bf16.msra.mxu0 %v1531_v22  ;;  %v95_v0 = vsel %vm83_vm0, %v90_v58, %v94_v53  ;;  %v126_v22 = vrot.slane %v1754_v3, 3  ;;  %v176_v36 = vsel %vm167_vm1, %v174_v15, %v175_v19  ;;  %v1556_v53 = vld [vmem:[#allocation7 + $0x30] sm:$0xff]   ;;  %v1559_v58 = vld [vmem:[#allocation7 + $0x68] sm:$0xff]   ;;  %v1580_v15 = vld [vmem:[#allocation7] sm:$0xff]  }
  0x40   :  { %1368 = vmatpush3.bf16.msra.mxu1 %v1532_v23  ;;  %1341 = vmatprep.subr.bf16.mxu0 %v1533_v24  ;;  %v171_v4 = vrot.slane %v95_v0, 4  ;;  %v122_v6 = vrot.slane %v95_v0, 3  ;;  %v508_v23 = vrot.slane %v1733_v42, 5  ;;  %v510_v24 = vrot.slane %v1752_v2, 5  ;;  %v1546_v42 = vld [vmem:[#allocation5 + $0x110] sm:$0xff]   ;;  %v1565_v0 = vld [vmem:[#allocation7 + $0xd8] sm:$0xff]  }
  0x41   :  { %1369 = vmatprep.subr.bf16.mxu1 %v1534_v25  ;;  %v511_v25 = vrot.slane %v1754_v3, 5  ;;  %v127_v37 = vsel %vm118_vm2, %v125_v20, %v126_v22  ;;  %v1567_v2 = vld [vmem:[#allocation7 + $0x58] sm:$0xff]   ;;  %v1576_v11 = vld [vmem:[#allocation7 + $0x8] sm:$0xff]  }
  0x42   :  { %v173_v13 = vsel %vm167_vm1, %v171_v4, %v172_v5  ;;  %v124_v14 = vsel %vm118_vm2, %v122_v6, %v123_v7  ;;  %v1568_v3 = vld [vmem:[#allocation7 + $0x18] sm:$0xff]   ;;  %v1569_v4 = vld [vmem:[#allocation7 + $0xd0] sm:$0xff]  }
  0x43   :  { %1342 = vmatpush3.bf16.msra.mxu0 %v1535_v26  ;;  %344 = vmatprep.mubr.bf16.mxu0 %v173_v13  ;;  %v105_v26 = vor.u32 %v104_v17, %v100_v9  ;;  %v512_v45 = vsel %vm506_vm3, %v510_v24, %v511_v25  ;;  %v1570_v5 = vld [vmem:[#allocation7 + $0x90] sm:$0xff]   ;;  %v1574_v9 = vld [vmem:[#allocation7 + $0x88] sm:$0xff]   ;;  %v1579_v13 = vld [vmem:[#allocation7 + $0x40] sm:$0xff]  }
  0x44   :  { %1370 = vmatpush3.bf16.msra.mxu1 %v1536_v27  ;;  %1343 = vmatprep.subr.bf16.mxu0 %v1537_v28  ;;  %v113_v27 = vor.u32 %v111_v12, %v109_v18  ;;  %v1571_v6 = vld [vmem:[#allocation7 + $0x50] sm:$0xff]   ;;  %v1577_v12 = vld [vmem:[#allocation7 + $0xc0] sm:$0xff]  }
  0x45   :  { %1371 = vmatprep.subr.bf16.mxu1 %v1538_v29  ;;  %489 = vmatprep.mubr.bf16.mxu1 %v124_v14  ;;  %v110_v28 = vsel %vm83_vm0, %v105_v26, %v109_v18  ;;  %v1572_v7 = vld [vmem:[#allocation7 + $0x10] sm:$0xff]   ;;  %v1578_v14 = vld [vmem:[#allocation7 + $0x80] sm:$0xff]  }
  0x46   :  { %v178_v29 = vrot.slane %v113_v27, 4  ;;  %v177_v32 = vrot.slane %v110_v28, 4  ;;  %v128_v35 = vrot.slane %v110_v28, 3 }
  0x47   :  { %1344 = vmatpush3.bf16.msra.mxu0 %v1539_v30  ;;  %v129_v30 = vrot.slane %v113_v27, 3 }
  0x48   :  { %1372 = vmatpush3.bf16.msra.mxu1 %v1540_v31  ;;  %1461 = vmatprep.subr.bf16.mxu0 %v1541_v40  ;;  %v1544_v31 = vld [vmem:[#allocation5 + $0x120] sm:$0xff]   ;;  %v179_v38 = vsel %vm167_vm1, %v177_v32, %v178_v29 }
  0x49   :  { %v130_v39 = vsel %vm118_vm2, %v128_v35, %v129_v30  ;;  %1395 = vmatprep.subr.bf16.mxu1 %v1549_v46 }
  0x4a   :  { %345 = vmatmul.mubr.bf16.vlgmr.msra.gmra.mxu0 %v170_v63  ;;  %v1564_v63 = vld [vmem:[#allocation7 + $0x20] sm:$0xff]  }
  0x4b   :  { %490 = vmatmul.mubr.bf16.vlgmr.msra.gmra.mxu1 %v121_v1  ;;  %1462 = vmatpush3.bf16.msra.mxu0 %v1541_v40  ;;  %v509_v40 = vsel %vm506_vm3, %v507_v16, %v508_v23  ;;  %v1566_v1 = vld [vmem:[#allocation7 + $0x98] sm:$0xff]  }
  0x4c   :  { %1463 = vmatprep.subr.bf16.mxu0 %v1542_v8  ;;  %352 = vmatprep.mubr.bf16.mxu0 %v179_v38  ;;  %v1777_v16 = vld [vmem:[#allocation7 + $0x138] sm:$0xff]  }
  0x4d   :  { %497 = vmatprep.mubr.bf16.mxu1 %v130_v39  ;;  %1396 = vmatpush3.bf16.msra.mxu1 %v1550_v47  ;;  %v1287_v47 = vld [vmem:[%s1829_s2] ss:$0 sm:$0xff] }
  0x4e   :  { %1397 = vmatprep.subr.bf16.mxu1 %v1553_v50 }
  0x4f   :  { %1464 = vmatpush3.bf16.msra.mxu0 %v1542_v8  ;;  %v1573_v8 = vld [vmem:[#allocation7 + $0xc8] sm:$0xff]  }
  0x50   :  { %1465 = vmatprep.subr.bf16.mxu0 %v1543_v21 }
  0x51   :  { %1398 = vmatpush3.bf16.msra.mxu1 %v1554_v51 }
  0x52   :  { %353 = vmatmul.mubr.bf16.gmra.mxu0 %v176_v36  ;;  %1399 = vmatprep.subr.bf16.mxu1 %v1557_v56 }
  0x53   :  { %498 = vmatmul.mubr.bf16.gmra.mxu1 %v127_v37  ;;  %1466 = vmatpush3.bf16.msra.mxu0 %v1543_v21 }
  0x54   :  { %1477 = vmatprep.mubr.bf16.mxu0 %v509_v40  ;;  %1467 = vmatprep.subr.bf16.mxu0 %v1544_v31 }
  0x55   :  { %1400 = vmatpush3.bf16.msra.mxu1 %v1558_v57 }
  0x56   :  { %1401 = vmatprep.subr.bf16.mxu1 %v1561_v60 }
  0x57   :  { %1468 = vmatpush3.bf16.msra.mxu0 %v1544_v31 }
  0x58   :  { %1469 = vmatprep.subr.bf16.mxu0 %v1545_v41 }
  0x59   :  { %1402 = vmatpush3.bf16.msra.mxu1 %v1562_v61 }
  0x5a   :  { %1403 = vmatprep.subr.bf16.mxu1 %v1565_v0 }
  0x5b   :  { %1470 = vmatpush3.bf16.msra.mxu0 %v1545_v41 }
  0x5c   :  { %1471 = vmatprep.subr.bf16.mxu0 %v1546_v42 }
  0x5d   :  { %1404 = vmatpush3.bf16.msra.mxu1 %v1566_v1 }
  0x5e   :  { %1405 = vmatprep.subr.bf16.mxu1 %v1569_v4 }
  0x5f   :  { %1472 = vmatpush3.bf16.msra.mxu0 %v1546_v42 }
  0x60   :  { %1473 = vmatprep.subr.bf16.mxu0 %v1547_v43 }
  0x61   :  { %1406 = vmatpush3.bf16.msra.mxu1 %v1570_v5 }
  0x62   :  { %1407 = vmatprep.subr.bf16.mxu1 %v1573_v8 }
  0x63   :  { %1474 = vmatpush3.bf16.msra.mxu0 %v1547_v43 }
  0x64   :  { %1475 = vmatprep.subr.bf16.mxu0 %v1548_v44 }
  0x65   :  { %1408 = vmatpush3.bf16.msra.mxu1 %v1574_v9 }
  0x66   :  { %1409 = vmatprep.subr.bf16.mxu1 %v1577_v12 }
  0x67   :  { %1476 = vmatpush3.bf16.msra.mxu0 %v1548_v44 }
  0x68   :  { %1423 = vmatprep.subr.bf16.mxu0 %v1551_v48 }
  0x69   :  { %1410 = vmatpush3.bf16.msra.mxu1 %v1578_v14 }
  0x6a   :  { %1478 = vmatmul.mubr.bf16.vlgmr.msra.gmra.mxu0 %v512_v45  ;;  %1481 = vmatprep.subr.bf16.mxu1 %v1777_v16 }
  0x6b   :  { %1424 = vmatpush3.bf16.msra.mxu0 %v1552_v49 }
  0x6c   :  { %1425 = vmatprep.subr.bf16.mxu0 %v1555_v52 }
  0x6f   :  { %1426 = vmatpush3.bf16.msra.mxu0 %v1556_v53 }
  0x70   :  { %1427 = vmatprep.subr.bf16.mxu0 %v1559_v58 }
  0x73   :  { %1428 = vmatpush3.bf16.msra.mxu0 %v1560_v59 }
  0x74   :  { %1429 = vmatprep.subr.bf16.mxu0 %v1563_v62 }
  0x77   :  { %1430 = vmatpush3.bf16.msra.mxu0 %v1564_v63 }
  0x78   :  { %1431 = vmatprep.subr.bf16.mxu0 %v1567_v2 }
  0x7b   :  { %1432 = vmatpush3.bf16.msra.mxu0 %v1568_v3 }
  0x7c   :  { %1433 = vmatprep.subr.bf16.mxu0 %v1571_v6 }
  0x7f   :  { %1434 = vmatpush3.bf16.msra.mxu0 %v1572_v7 }
  0x80   :  { %1435 = vmatprep.subr.bf16.mxu0 %v1575_v10 }
  0x83   :  { %1436 = vmatpush3.bf16.msra.mxu0 %v1576_v11 }
  0x84   :  { %1437 = vmatprep.subr.bf16.mxu0 %v1579_v13 }
  0x87   :  { %1438 = vmatpush3.bf16.msra.mxu0 %v1580_v15 }
 0x10a   :  { %v1345_v17 = vpop.f32.mrf.mxu0 }
 0x10b   :  { %v1373_v18 = vpop.f32.mrf.mxu1 }
 0x10c   :  { %v1346_v19 = vpop.f32.mrf.mxu0 }
 0x10d   :  { %v1374_v20 = vpop.f32.mrf.mxu1  ;;  %v1347_v37 = vadd.f32 %v1346_v19, %v1345_v17 }
 0x10e   :  { %v1348_v21 = vpop.f32.mrf.mxu0  ;;  %v1375_v38 = vadd.f32 %v1374_v20, %v1373_v18 }
 0x10f   :  { %v1376_v22 = vpop.f32.mrf.mxu1 }
 0x110   :  { %v1349_v23 = vpop.f32.mrf.mxu0  ;;  %v492_v46 = vadd.f32 %v1375_v38, %v1347_v37 }
 0x111   :  { %v1377_v24 = vpop.f32.mrf.mxu1  ;;  %v1350_v43 = vadd.f32 %v1349_v23, %v1348_v21 }
 0x112   :  { %v1351_v25 = vpop.f32.mrf.mxu0  ;;  %v1378_v44 = vadd.f32 %v1377_v24, %v1376_v22 }
 0x113   :  { %v1379_v26 = vpop.f32.mrf.mxu1 }
 0x114   :  { %v1352_v27 = vpop.f32.mrf.mxu0  ;;  %v495_v56 = vadd.f32 %v1378_v44, %v1350_v43 }
 0x115   :  { %v1380_v28 = vpop.f32.mrf.mxu1  ;;  %v1353_v31 = vadd.f32 %v1352_v27, %v1351_v25 }
 0x116   :  { %v1354_v29 = vpop.f32.mrf.mxu0  ;;  %v1381_v32 = vadd.f32 %v1380_v28, %v1379_v26 }
 0x117   :  { %v1382_v30 = vpop.f32.mrf.mxu1 }
 0x118   :  { %v1355_v35 = vpop.f32.mrf.mxu0  ;;  %v500_v41 = vadd.f32 %v1381_v32, %v1353_v31 }
 0x119   :  { %v1383_v36 = vpop.f32.mrf.mxu1  ;;  %v1356_v39 = vadd.f32 %v1355_v35, %v1354_v29 }
 0x11a   :  { %v1384_v40 = vadd.f32 %v1383_v36, %v1382_v30 }
 0x11c   :  { %v503_v50 = vadd.f32 %v1384_v40, %v1356_v39 }
 0x12a   :  { %v1479_v42 = vpop.f32.mrf.mxu0 }
 0x12b   :  { %v630_v45 = vadd.f32 %v1479_v42, %v500_v41 }
 0x12c   :  { %v613_v48 = vpop.f32.mrf.mxu0 }
 0x12d   :  { %v628_v49 = vadd.f32 %v613_v48, %v492_v46  ;;  %v641_v52 = vadd.f32 %v1287_v47, %v630_v45  ;;  %v1582_v45 = vld [vmem:[#allocation7 + $0x130] sm:$0xff]  }
 0x12e   :  { %v1480_v51 = vpop.f32.mrf.mxu0 }
 0x12f   :  { %v631_v53 = vadd.f32 %v1480_v51, %v503_v50  ;;  %v639_v58 = vadd.f32 %v1287_v47, %v628_v49  ;;  %v645_v61 = vmax.f32 %v641_v52, 0.0  ;;  %v1583_v50 = vld [vmem:[#allocation7 + $0x128] sm:$0xff]  }
 0x130   :  { %v616_v57 = vpop.f32.mrf.mxu0 }
 0x131   :  { %v642_v59 = vadd.f32 %v1287_v47, %v631_v53  ;;  %v629_v60 = vadd.f32 %v616_v57, %v495_v56  ;;  %v643_v0 = vmax.f32 %v639_v58, 0.0 }
 0x133   :  { %v646_v62 = vmax.f32 %v642_v59, 0.0  ;;  %v640_v63 = vadd.f32 %v1287_v47, %v629_v60  ;;  %v1584_v59 = vld [vmem:[#allocation7 + $0x120] sm:$0xff]  }
 0x135   :  { %v648_v1 = vpack.c.bf16 %v646_v62, %v645_v61  ;;  %v644_v2 = vmax.f32 %v640_v63, 0.0  ;;  %v1585_v62 = vld [vmem:[#allocation7 + $0x118] sm:$0xff]   ;;  %v1586_v63 = vld [vmem:[#allocation7 + $0x110] sm:$0xff]  }
 0x137   :  { %v652_v3 = vrot.slane %v648_v1, 4  ;;  %v647_v4 = vpack.c.bf16 %v644_v2, %v643_v0  ;;  %v1587_v0 = vld [vmem:[#allocation7 + $0x108] sm:$0xff]   ;;  %v1588_v1 = vld [vmem:[#allocation7 + $0x100] sm:$0xff]  }
 0x139   :  { %v1784_v5 = vsel %vm167_vm1, 0, %v652_v3  ;;  %v1787_v6 = vsel %vm167_vm1, %v652_v3, 0  ;;  %v651_v7 = vrot.slane %v647_v4, 4 }
 0x13a   :  { %v676_v8 = vshll.u32 %v1784_v5, 16  ;;  %v680_v9 = vshll.u32 %v1787_v6, 16  ;;  %v674_v17 = vshrl.u32 %v1784_v5, 16  ;;  %v684_v18 = vshrl.u32 %v1787_v6, 16 }
 0x13b   :  { %v656_v10 = vsel %vm167_vm1, 0, %v651_v7  ;;  %v659_v11 = vsel %vm167_vm1, %v651_v7, 0  ;;  %v745_v51 = vrot.slane %v1784_v5, 4  ;;  %v746_v52 = vrot.slane %v1787_v6, 4 }
 0x13c   :  { %v663_v12 = vshll.u32 %v656_v10, 16  ;;  %v667_v13 = vshll.u32 %v659_v11, 16  ;;  %v661_v14 = vshrl.u32 %v656_v10, 16  ;;  %v671_v15 = vshrl.u32 %v659_v11, 16 }
 0x13d   :  { %v678_v21 = vrot.slane %v676_v8, 1  ;;  %v682_v22 = vrot.slane %v680_v9, 1  ;;  %v739_v27 = vrot.slane %v656_v10, 4  ;;  %v740_v28 = vrot.slane %v659_v11, 4 }
 0x13e   :  { %v665_v19 = vrot.slane %v663_v12, 1  ;;  %v669_v20 = vrot.slane %v667_v13, 1  ;;  %v691_v29 = vrot.slane %v656_v10, 3  ;;  %v692_v30 = vrot.slane %v659_v11, 3 }
 0x13f   :  { %v679_v25 = vor.u32 %v678_v21, %v674_v17  ;;  %v686_v26 = vor.u32 %v684_v18, %v682_v22  ;;  %v741_v46 = vsel %vm167_vm1, %v739_v27, %v740_v28  ;;  %v697_v53 = vrot.slane %v1784_v5, 3 }
 0x140   :  { %v666_v23 = vor.u32 %v665_v19, %v661_v14  ;;  %v673_v24 = vor.u32 %v671_v15, %v669_v20  ;;  %v693_v47 = vsel %vm118_vm2, %v691_v29, %v692_v30  ;;  %v698_v56 = vrot.slane %v1787_v6, 3  ;;  %v1328_v30 = vld [vmem:[%s1831_s4] ss:$0 sm:$0xff]  ;;  %s1682_s4 = smov [#allocation8]  }
 0x141   :  { %v683_v36 = vsel %vm83_vm0, %v679_v25, %v682_v22  ;;  %v749_v40 = vrot.slane %v686_v26, 4  ;;  %v701_v42 = vrot.slane %v686_v26, 3  ;;  %v1077_v57 = vrot.slane %v656_v10, 5  ;;  %s1234_s12 = sshll.u32 %s1682_s4, 4  ;;  %s1235_s12 = int_to_ptr.vmem [resolvable:$true] %s1234_s12 }
 0x142   :  { %v670_v31 = vsel %vm83_vm0, %v666_v23, %v669_v20  ;;  %v743_v32 = vrot.slane %v673_v24, 4  ;;  %v695_v35 = vrot.slane %v673_v24, 3  ;;  %v748_v39 = vrot.slane %v683_v36, 4  ;;  %s1649_s13 = scalar_lea.vmem %s1235_s12, 512  ;;  %p1654_p2 = scmp.lt.s32.totalorder %s1235_s12, %s1235_s12 }
 0x143   :  { %v742_v37 = vrot.slane %v670_v31, 4  ;;  %v694_v38 = vrot.slane %v670_v31, 3  ;;  %v700_v41 = vrot.slane %v683_v36, 3  ;;  %v1078_v58 = vrot.slane %v659_v11, 5  ;;  %p1650_p1 = scmp.ne.s32.totalorder %s1235_s12, %s1649_s13  ;;  %p1655_p3 = scmp.lt.s32.totalorder %s1649_s13, %s1649_s13 }
 0x144   :  { %v750_v48 = vsel %vm167_vm1, %v748_v39, %v749_v40  ;;  %v699_v60 = vsel %vm118_vm2, %v697_v53, %v698_v56  ;;  %v1080_v2 = vrot.slane %v1784_v5, 5  ;;  %v1081_v3 = vrot.slane %v1787_v6, 5 }
 0x145   :  { %v744_v43 = vsel %vm167_vm1, %v742_v37, %v743_v32  ;;  %v696_v44 = vsel %vm118_vm2, %v694_v38, %v695_v35  ;;  %v702_v49 = vsel %vm118_vm2, %v700_v41, %v701_v42  ;;  %v1079_v61 = vsel %vm506_vm3, %v1077_v57, %v1078_v58  ;;  %p1656_p4 = por %p1655_p3, %p1654_p2 }
 0x146   :  { %915 = vmatprep.mubr.bf16.mxu1 %v744_v43  ;;  %1060 = vmatprep.mubr.bf16.mxu0 %v696_v44  ;;  %v1082_v4 = vsel %vm506_vm3, %v1080_v2, %v1081_v3 }
 0x147   :  { %916 = vmatmul.mubr.bf16.vlgmr.msra.gmra.mxu1 %v741_v46  ;;  %1061 = vmatmul.mubr.bf16.vlgmr.msra.gmra.mxu0 %v693_v47  ;;  %p1657_p5 = pnand %p1656_p4, %p1650_p1 }
 0x148   :  { %1482 = vmatpush3.bf16.msra.mxu1 %v1777_v16  ;;  %923 = vmatprep.mubr.bf16.mxu1 %v750_v48  ;;  %v747_v16 = vsel %vm167_vm1, %v745_v51, %v746_v52 }
 0x149   :  { %1068 = vmatprep.mubr.bf16.mxu0 %v702_v49  ;;  %1483 = vmatprep.subr.bf16.mxu1 %v1582_v45 }
 0x14c   :  { %1484 = vmatpush3.bf16.msra.mxu1 %v1582_v45 }
 0x14d   :  { %1485 = vmatprep.subr.bf16.mxu1 %v1583_v50 }
 0x14f   :  { %924 = vmatmul.mubr.bf16.gmra.mxu1 %v747_v16  ;;  %1069 = vmatmul.mubr.bf16.gmra.mxu0 %v699_v60 }
 0x150   :  { %1486 = vmatpush3.bf16.msra.mxu1 %v1583_v50  ;;  %1497 = vmatprep.mubr.bf16.mxu1 %v1079_v61 }
 0x151   :  { %1487 = vmatprep.subr.bf16.mxu1 %v1584_v59 }
 0x154   :  { %1488 = vmatpush3.bf16.msra.mxu1 %v1584_v59 }
 0x155   :  { %1489 = vmatprep.subr.bf16.mxu1 %v1585_v62 }
 0x158   :  { %1490 = vmatpush3.bf16.msra.mxu1 %v1585_v62 }
 0x159   :  { %1491 = vmatprep.subr.bf16.mxu1 %v1586_v63 }
 0x15c   :  { %1492 = vmatpush3.bf16.msra.mxu1 %v1586_v63 }
 0x15d   :  { %1493 = vmatprep.subr.bf16.mxu1 %v1587_v0 }
 0x160   :  { %1494 = vmatpush3.bf16.msra.mxu1 %v1587_v0 }
 0x161   :  { %1495 = vmatprep.subr.bf16.mxu1 %v1588_v1 }
 0x164   :  { %1496 = vmatpush3.bf16.msra.mxu1 %v1588_v1 }
 0x167   :  { %1498 = vmatmul.mubr.bf16.vlgmr.msra.gmra.mxu1 %v1082_v4 }
 0x207   :  { %v1411_v7 = vpop.f32.mrf.mxu1  ;;  %v1439_v8 = vpop.f32.mrf.mxu0 }
 0x209   :  { %v1412_v9 = vpop.f32.mrf.mxu1  ;;  %v1440_v10 = vpop.f32.mrf.mxu0 }
 0x20a   :  { %v1413_v24 = vadd.f32 %v1412_v9, %v1411_v7  ;;  %v1441_v25 = vadd.f32 %v1440_v10, %v1439_v8 }
 0x20b   :  { %v1414_v11 = vpop.f32.mrf.mxu1  ;;  %v1442_v12 = vpop.f32.mrf.mxu0 }
 0x20c   :  { %v1063_v36 = vadd.f32 %v1441_v25, %v1413_v24 }
 0x20d   :  { %v1415_v13 = vpop.f32.mrf.mxu1  ;;  %v1443_v14 = vpop.f32.mrf.mxu0 }
 0x20e   :  { %v1416_v31 = vadd.f32 %v1415_v13, %v1414_v11  ;;  %v1444_v32 = vadd.f32 %v1443_v14, %v1442_v12 }
 0x20f   :  { %v1417_v15 = vpop.f32.mrf.mxu1  ;;  %v1445_v17 = vpop.f32.mrf.mxu0 }
 0x210   :  { %v1066_v45 = vadd.f32 %v1444_v32, %v1416_v31 }
 0x211   :  { %v1418_v18 = vpop.f32.mrf.mxu1  ;;  %v1446_v19 = vpop.f32.mrf.mxu0 }
 0x212   :  { %v1419_v21 = vadd.f32 %v1418_v18, %v1417_v15  ;;  %v1447_v6 = vadd.f32 %v1446_v19, %v1445_v17 }
 0x213   :  { %v1420_v20 = vpop.f32.mrf.mxu1  ;;  %v1448_v5 = vpop.f32.mrf.mxu0 }
 0x214   :  { %v1071_v28 = vadd.f32 %v1447_v6, %v1419_v21 }
 0x215   :  { %v1421_v22 = vpop.f32.mrf.mxu1  ;;  %v1449_v23 = vpop.f32.mrf.mxu0 }
 0x216   :  { %v1422_v26 = vadd.f32 %v1421_v22, %v1420_v20  ;;  %v1450_v27 = vadd.f32 %v1449_v23, %v1448_v5 }
 0x218   :  { %v1074_v40 = vadd.f32 %v1450_v27, %v1422_v26 }
 0x227   :  { %v1499_v29 = vpop.f32.mrf.mxu1 }
 0x228   :  { %v1200_v35 = vadd.f32 %v1499_v29, %v1071_v28 }
 0x229   :  { %v1183_v37 = vpop.f32.mrf.mxu1 }
 0x22a   :  { %v1211_v38 = vadd.f32 %v1328_v30, %v1200_v35  ;;  %v1198_v39 = vadd.f32 %v1183_v37, %v1063_v36 }
 0x22b   :  { %v1500_v41 = vpop.f32.mrf.mxu1 }
 0x22c   :  { %v1219_v42 = vmul.f32 0.3, %v1211_v38  ;;  %v1209_v43 = vadd.f32 %v1328_v30, %v1198_v39  ;;  %v1201_v44 = vadd.f32 %v1500_v41, %v1074_v40 }
 0x22d   :  { %v1186_v46 = vpop.f32.mrf.mxu1 }
 0x22e   :  { %v1223_v47 = vadd.f32 %v1219_v42, %v1743_v54  ;;  %v1217_v48 = vmul.f32 0.3, %v1209_v43  ;;  %v1212_v49 = vadd.f32 %v1328_v30, %v1201_v44  ;;  %v1199_v50 = vadd.f32 %v1186_v46, %v1066_v45 }
 0x230   :  { %1227 = vst [vmem:[#allocation8 + $0x10] sm:$0xff] %v1223_v47  ;;  %v1221_v51 = vadd.f32 %v1217_v48, %v1725_v33  ;;  %v1220_v52 = vmul.f32 0.3, %v1212_v49  ;;  %v1210_v53 = vadd.f32 %v1328_v30, %v1199_v50 }
 0x232   :  { %1225 = vst [vmem:[#allocation8] sm:$0xff] %v1221_v51  ;;  %v1224_v56 = vadd.f32 %v1220_v52, %v1745_v55  ;;  %v1218_v57 = vmul.f32 0.3, %v1210_v53 }
 0x234   :  { %1228 = vst [vmem:[#allocation8 + $0x18] sm:$0xff] %v1224_v56  ;;  %v1222_v58 = vadd.f32 %v1218_v57, %v1727_v34 }
 0x236   :  { %1226 = vst [vmem:[#allocation8 + $0x8] sm:$0xff] %v1222_v58 }
 0x237   :  { %1660 = shalt.err (!%p1657_p5)
}
 0x238   :  { %1240 = dma.vmem_to_hbm [thread:$0]  %s1235_s12, 512, %s1832_s5, [#allocation4], %s1679_s28, %s1679_s28, %s1680_s29  }
 0x239   :  { %1673 = dma.done.wait [#allocation4], 512  }
 0x23a   :  { %1674 = vsyncadd [#allocation4], 4294966784 }
 0x23b   :  { %1244 = vsyncpa [#allocation3], 1 }
 0x23c   :  { %1245 = vsyncpa [#allocation6], 1 }
 0x23d   :  { %1246 = vsyncpa [#allocation4], 1 }

</bundles_post_ra>
